<compile_context>
chip_gen: v6e
topology: v6e:2x2x1
jax: 0.10.0
libtpu: 0.0.40
codegen_flags: <defaults>
</compile_context>

<pallas_src>
import jax
import jax.numpy as jnp
from jax.experimental import pallas as pl
from jax.experimental.pallas import tpu as pltpu


def _round_up(x, m):
    return (x + m - 1) // m * m


# ----------------------------------------------------------------------------
# Pallas kernel: tiled GEMM  out[M, N] = x[M, K] @ w[K, N]
#   grid = (M/tm, N/tn, K/tk); f32 accumulator lives in VMEM scratch and the
#   result is cast/stored on the last K step.
# ----------------------------------------------------------------------------
def _matmul_kernel(x_ref, w_ref, o_ref, acc_ref):
    @pl.when(pl.program_id(2) == 0)
    def _init():
        acc_ref[...] = jnp.zeros_like(acc_ref)

    acc_ref[...] += jnp.dot(
        x_ref[...], w_ref[...], preferred_element_type=jnp.float32
    )

    @pl.when(pl.program_id(2) == pl.num_programs(2) - 1)
    def _store():
        o_ref[...] = acc_ref[...].astype(o_ref.dtype)


def _pallas_matmul(x, w, out_dtype):
    """out[M, N] = x[M, K] @ w[K, N] with f32 accumulation, tiled for TPU."""
    M, K = x.shape
    K2, N = w.shape
    assert K == K2

    # Tile sizes: sublane-aligned M (>=8), lane-dense 128-aligned N, 128-aligned
    # K (capped at 512).  Safe on v5e (128-wide MXU, 16 MiB scoped VMEM) and
    # leaves plenty of headroom on v6e/v7x; small problems collapse to 1 tile.
    tm = min(128, _round_up(M, 8))
    tn = 128
    tk = min(512, _round_up(K, 128))

    Mp = _round_up(M, tm)
    Np = _round_up(N, tn)
    Kp = _round_up(K, tk)

    # Zero-pad to tile multiples: padded K rows/cols contribute 0 to the dot,
    # padded N columns are sliced off below.  Padding makes the output stores
    # unmasked full-width lane stores.
    if (Mp, Kp) != (M, K):
        x = jnp.pad(x, ((0, Mp - M), (0, Kp - K)))
    if (Kp, Np) != (K, N):
        w = jnp.pad(w, ((0, Kp - K), (0, Np - N)))

    grid = (Mp // tm, Np // tn, Kp // tk)

    out = pl.pallas_call(
        _matmul_kernel,
        out_shape=jax.ShapeDtypeStruct((Mp, Np), out_dtype),
        grid_spec=pltpu.PrefetchScalarGridSpec(
            num_scalar_prefetch=0,
            grid=grid,
            in_specs=[
                pl.BlockSpec((tm, tk), lambda i, j, k: (i, k)),
                pl.BlockSpec((tk, tn), lambda i, j, k: (k, j)),
            ],
            out_specs=pl.BlockSpec((tm, tn), lambda i, j, k: (i, j)),
            scratch_shapes=[pltpu.VMEM((tm, tn), jnp.float32)],
        ),
        compiler_params=pltpu.CompilerParams(
            dimension_semantics=("parallel", "parallel", "arbitrary"),
            vmem_limit_bytes=32 * 1024 * 1024,
        ),
        cost_estimate=pl.CostEstimate(
            flops=2 * Mp * Np * Kp,
            bytes_accessed=(Mp * Kp) * x.dtype.itemsize
            + (Kp * Np) * w.dtype.itemsize
            + (Mp * Np) * jnp.dtype(out_dtype).itemsize,
            transcendentals=0,
        ),
    )(x, w)

    return out[:M, :N]


# ----------------------------------------------------------------------------
# unfoldNd equivalent for 3 spatial dims (im2col).  Ordering matches
# torch.nn.Unfold / unfoldNd: column index = ((c*k + kh)*k + kw)*k + kl.
# Kept as the general fallback; the L==1 fast path avoids it entirely.
# ----------------------------------------------------------------------------
def unfold3d(x, k, dilation=1, padding=0, stride=1):
    b, c, h, w, l = x.shape
    if padding == "same":
        if stride != 1:
            raise ValueError("'same' padding requires stride == 1")
        total = dilation * (k - 1)
        pads = [(total // 2, total - total // 2)] * 3
    else:
        pads = [(int(padding), int(padding))] * 3
    xp = jnp.pad(x, ((0, 0), (0, 0)) + tuple(pads))
    H, W, L = xp.shape[2:]
    oh = (H - dilation * (k - 1) - 1) // stride + 1
    ow = (W - dilation * (k - 1) - 1) // stride + 1
    ol = (L - dilation * (k - 1) - 1) // stride + 1
    patches = []
    for ki in range(k):
        for kj in range(k):
            for kl in range(k):
                sl = xp[
                    :, :,
                    ki * dilation: ki * dilation + (oh - 1) * stride + 1: stride,
                    kj * dilation: kj * dilation + (ow - 1) * stride + 1: stride,
                    kl * dilation: kl * dilation + (ol - 1) * stride + 1: stride,
                ]
                patches.append(sl)
    cols = jnp.stack(patches, axis=2)              # (B, C, k^3, oh, ow, ol)
    return cols.reshape(b, c * k ** 3, oh * ow * ol)


# ----------------------------------------------------------------------------
# Conv4D module equivalent
# ----------------------------------------------------------------------------
class Conv4D:
    def __init__(self, cin, cout, k, s=1, pad="same", dilation=1, g=1, b=True,
                 dtype=jnp.float32, compute_dtype=jnp.bfloat16, key=None):
        if key is None:
            key = jax.random.PRNGKey(0)
        kw, kb = jax.random.split(key)
        # PyTorch inits these to zeros; use deterministic random values so the
        # test exercises the matmul non-trivially.
        self.weight = 0.05 * jax.random.normal(kw, (1, cout, cin * k ** 3), dtype)
        self.bias = 0.05 * jax.random.normal(kb, (cout,), dtype) if b else None
        # NOTE: bias is intentionally NOT added in forward (matches the PyTorch
        # module).
        # Pre-transposed, pre-cast weight (K-major, MXU dtype): (Cin*k^3, Cout).
        self.w_t = jnp.transpose(self.weight[0]).astype(compute_dtype)
        self.cin = cin
        self.cout = cout
        self.k = k
        self.s = s
        self.pad = pad
        self.dilation = dilation
        self.out_dtype = dtype
        self.compute_dtype = compute_dtype

    def __call__(self, x):
        b, c, h, w, l = x.shape
        k = self.k
        if (self.pad in (0, "valid") and self.dilation == 1 and self.s == 1
                and (h, w, l) == (k, k, k)):
            # Single sliding position, no padding/dilation: im2col is a pure
            # reshape — (c, kh, kw, kl) order equals native (c, h, w, l) order.
            x_flat = x.reshape(b, c * k ** 3)
        else:
            cols = unfold3d(x, k, self.dilation, self.pad, self.s)
            B, CK3, Lp = cols.shape
            # `.view(b, cout)` in the reference requires exactly one patch.
            assert Lp == 1, (
                f"view(b, cout) requires a single sliding position, got L={Lp}")
            # TODO(synk): for Lp > 1 variants, add an Lp grid axis instead of
            # asserting (the reference module itself cannot handle Lp > 1).
            x_flat = cols[..., 0]

        out = _pallas_matmul(
            x_flat.astype(self.compute_dtype), self.w_t, self.out_dtype
        )                                          # (B, Cout)
        return out.reshape(b, self.cout)


if __name__ == "__main__":
    key = jax.random.PRNGKey(0)
    k_x, k_w = jax.random.split(key)

    # Small shapes: kernel covers the full spatial extent (h=w=l=k) so there is
    # exactly one sliding position, as the reference forward requires.
    B, Cin, Cout, K = 2, 4, 8, 3
    x = jax.random.normal(k_x, (B, Cin, K, K, K), jnp.float32)

    conv = Conv4D(Cin, Cout, K, s=1, pad=0, dilation=1, b=True, key=k_w)
    out = jax.block_until_ready(conv(x))
    assert out.shape == (B, Cout)

    # Pure-JAX reference with the same bf16 inputs + f32 accumulation.
    x_ref = x.reshape(B, Cin * K ** 3).astype(jnp.bfloat16).astype(jnp.float32)
    w_ref = conv.w_t.astype(jnp.float32)
    ref = jnp.dot(x_ref, w_ref)
    assert jnp.allclose(out, ref, atol=1e-3, rtol=1e-3), (
        f"max abs err = {jnp.max(jnp.abs(out - ref))}")

    # Sanity: the reshape fast-path matches the general unfold3d fallback.
    cols_ref = unfold3d(x, K, 1, 0, 1)
    assert cols_ref.shape == (B, Cin * K ** 3, 1)
    assert jnp.allclose(cols_ref[..., 0], x.reshape(B, Cin * K ** 3))

    print("KERNEL_OK")
</pallas_src>

<mosaic_0001>
module attributes {stable_mosaic.version = 11 : i64} {
  func.func @_matmul_kernel(%arg0: i32, %arg1: i32, %arg2: i32, %arg3: memref<8x128xbf16, #tpu.memory_space<vmem>>, %arg4: memref<128x128xbf16, #tpu.memory_space<vmem>>, %arg5: memref<8x128xf32, #tpu.memory_space<vmem>>, %arg6: memref<8x128xf32, #tpu.memory_space<vmem>>) attributes {dimension_semantics = [#tpu.dimension_semantics<parallel>, #tpu.dimension_semantics<parallel>, #tpu.dimension_semantics<arbitrary>], iteration_bounds = array<i64: 1, 1, 1>, scalar_prefetch = 0 : i64, scratch_operands = 1 : i64, tpu.core_type = #tpu.core_type<tc>, window_params = [{transform_indices = @transform_0, window_bounds = array<i64: 8, 128>}, {transform_indices = @transform_1, window_bounds = array<i64: 128, 128>}, {transform_indices = @transform_2, window_bounds = array<i64: 8, 128>}]} {
    %c0_i32 = arith.constant 0 : i32
    %0 = arith.cmpi eq, %arg2, %c0_i32 : i32
    %1 = arith.extui %0 : i1 to i32
    %c0_i32_0 = arith.constant 0 : i32
    %2 = arith.cmpi ne, %1, %c0_i32_0 : i32
    scf.if %2 {
      %cst_10 = arith.constant 0.000000e+00 : f32
      %12 = vector.broadcast %cst_10 : f32 to vector<8x128xf32>
      %c0_11 = arith.constant 0 : index
      %c0_12 = arith.constant 0 : index
      %13 = vector.load %arg6[%c0_11, %c0_12] : memref<8x128xf32, #tpu.memory_space<vmem>>, vector<8x128xf32>
      tpu.vector_store %arg6[%c0_11, %c0_12], %12 {strides = array<i32>} : memref<8x128xf32, #tpu.memory_space<vmem>>, vector<8x128xf32>,
    } else {
    }
    %c0 = arith.constant 0 : index
    %c0_1 = arith.constant 0 : index
    %3 = vector.load %arg6[%c0, %c0_1] : memref<8x128xf32, #tpu.memory_space<vmem>>, vector<8x128xf32>
    %c0_2 = arith.constant 0 : index
    %c0_3 = arith.constant 0 : index
    %4 = vector.load %arg3[%c0_2, %c0_3] : memref<8x128xbf16, #tpu.memory_space<vmem>>, vector<8x128xbf16>
    %c0_4 = arith.constant 0 : index
    %c0_5 = arith.constant 0 : index
    %5 = vector.load %arg4[%c0_4, %c0_5] : memref<128x128xbf16, #tpu.memory_space<vmem>>, vector<128x128xbf16>
    %cst = arith.constant dense<0.000000e+00> : vector<8x128xf32>
    %6 = tpu.matmul %4, %5, %cst {dimension_numbers = #tpu.dot_dimension_numbers<[1], [0], [0], [1], [0, 0, 1, 1], [], []>} : vector<8x128xbf16>, vector<128x128xbf16>, vector<8x128xf32> -> vector<8x128xf32>
    %7 = arith.addf %3, %6 : vector<8x128xf32>
    %c0_6 = arith.constant 0 : index
    %c0_7 = arith.constant 0 : index
    %8 = vector.load %arg6[%c0_6, %c0_7] : memref<8x128xf32, #tpu.memory_space<vmem>>, vector<8x128xf32>
    tpu.vector_store %arg6[%c0_6, %c0_7], %7 {strides = array<i32>} : memref<8x128xf32, #tpu.memory_space<vmem>>, vector<8x128xf32>,
    %c0_i32_8 = arith.constant 0 : i32
    %9 = arith.cmpi eq, %arg2, %c0_i32_8 : i32
    %10 = arith.extui %9 : i1 to i32
    %c0_i32_9 = arith.constant 0 : i32
    %11 = arith.cmpi ne, %10, %c0_i32_9 : i32
    scf.if %11 {
      %c0_10 = arith.constant 0 : index
      %c0_11 = arith.constant 0 : index
      %12 = vector.load %arg6[%c0_10, %c0_11] : memref<8x128xf32, #tpu.memory_space<vmem>>, vector<8x128xf32>
      %c0_12 = arith.constant 0 : index
      %c0_13 = arith.constant 0 : index
      %13 = vector.load %arg5[%c0_12, %c0_13] : memref<8x128xf32, #tpu.memory_space<vmem>>, vector<8x128xf32>
      tpu.vector_store %arg5[%c0_12, %c0_13], %12 {strides = array<i32>} : memref<8x128xf32, #tpu.memory_space<vmem>>, vector<8x128xf32>,
    } else {
    }
    return
  }
  func.func @transform_0(%arg0: i32, %arg1: i32, %arg2: i32) -> (i32, i32) {
    %c0_i32 = arith.constant 0 : i32
    return %arg0, %arg2 : i32, i32
  }
  func.func @transform_1(%arg0: i32, %arg1: i32, %arg2: i32) -> (i32, i32) {
    %c0_i32 = arith.constant 0 : i32
    return %arg2, %arg1 : i32, i32
  }
  func.func @transform_2(%arg0: i32, %arg1: i32, %arg2: i32) -> (i32, i32) {
    %c0_i32 = arith.constant 0 : i32
    return %arg0, %arg1 : i32, i32
  }
}

</mosaic_0001>

<bundles_post_ra>
// kernel: tpu_custom_call.1
= control target key start
LH: loop header
LB: loop body
LE: loop exit
PB: predicated region body
PF: predicated region fallthrough
CT: control target
= control target key end

     0   :  { %7 = vsyncpa [#allocation4], 0  ;;  %s322_s0 = inlined_call_operand.hbm [shape: bf16[8,128], index: 0, kind: input, shape index: {}]   ;;  %s323_s1 = inlined_call_operand.hbm [shape: bf16[128,128], index: 1, kind: input, shape index: {}]   ;;  %s324_s2 = inlined_call_operand.hbm [shape: f32[8,128], index: 2, kind: output, shape index: {}]  }
   0x1   :  { %8 = vsyncpa [#allocation7], 0 }
   0x2   :  { %9 = vsyncpa [#allocation5], 0  ;;  %s291_s9 = smov [#allocation3]   ;;  %s292_s11 = smov [#allocation6]  }
   0x3   :  { %s16_s10 = sshll.u32 %s291_s9, 4  ;;  %s25_s12 = sshll.u32 %s292_s11, 4  ;;  %s17_s10 = int_to_ptr.vmem [resolvable:$true] %s16_s10  ;;  %s26_s12 = int_to_ptr.vmem [resolvable:$true] %s25_s12 }
   0x4   :  { %s233_s13 = scalar_lea.vmem %s17_s10, 64  ;;  %p238_p1 = scmp.lt.s32.totalorder %s17_s10, %s17_s10 }
   0x5   :  { %p234_p0 = scmp.ne.s32.totalorder %s17_s10, %s233_s13  ;;  %p239_p2 = scmp.lt.s32.totalorder %s233_s13, %s233_s13 }
   0x7   :  { %p240_p3 = por %p239_p2, %p238_p1 }
   0x9   :  { %p241_p4 = pnand %p240_p3, %p234_p0 }
   0xb   :  { %244 = shalt.err (!%p241_p4)
}
   0xc   :  { %19 = dma.hbm_to_vmem [thread:$0]  %s322_s0, 64, %s17_s10, [#allocation4]  }
   0xd   :  { %s253_s16 = scalar_lea.vmem %s26_s12, 1024  ;;  %p258_p6 = scmp.lt.s32.totalorder %s26_s12, %s26_s12 }
   0xe   :  { %p254_p5 = scmp.ne.s32.totalorder %s26_s12, %s253_s16  ;;  %p259_p7 = scmp.lt.s32.totalorder %s253_s16, %s253_s16 }
  0x10   :  { %p260_p8 = por %p259_p7, %p258_p6 }
  0x12   :  { %p261_p9 = pnand %p260_p8, %p254_p5 }
  0x14   :  { %264 = shalt.err (!%p261_p9)
}
  0x15   :  { %s293_s17 = smov 64   ;;  %s294_s18 = smov 4  }
  0x16   :  { %31 = dma.hbm_to_vmem [thread:$0]  %s323_s1, 1024, %s26_s12, [#allocation7], %s293_s17, %s293_s17, %s294_s18  }
  0x17   :  { %285 = dma.done.wait [#allocation4], 64  }
  0x18   :  { %286 = vsyncadd [#allocation4], 4294967232 }
  0x19   :  { %287 = dma.done.wait [#allocation7], 1024  }
  0x1a   :  { %288 = vsyncadd [#allocation7], 4294966272  ;;  %v295_v0 = vmov 0.0   ;;  %vm296_vm0 = vmmov 0   ;;  %v217_v1 = vld [vmem:[#allocation6 + $0x38] sm:$0xff]   ;;  %v218_v2 = vld [vmem:[#allocation6 + $0x30] sm:$0xff]  }
  0x1b   :  { %190 = vmatprep.subr.bf16.mxu0 %v295_v0  ;;  %206 = vmatprep.mubr.msk.bf16.mxu0 %vm296_vm0, %v295_v0  ;;  %v219_v3 = vld [vmem:[#allocation6 + $0x28] sm:$0xff]   ;;  %v220_v4 = vld [vmem:[#allocation6 + $0x20] sm:$0xff]   ;;  %v221_v5 = vld [vmem:[#allocation6 + $0x18] sm:$0xff]   ;;  %s297_s0 = smov [#allocation8]  }
  0x1c   :  { %191 = vmatpush3.bf16.msra.mxu0 %v217_v1  ;;  %v222_v6 = vld [vmem:[#allocation6 + $0x10] sm:$0xff]   ;;  %v223_v7 = vld [vmem:[#allocation6 + $0x8] sm:$0xff]   ;;  %v224_v8 = vld [vmem:[#allocation6] sm:$0xff]   ;;  %s163_s1 = sshll.u32 %s297_s0, 4  ;;  %s164_s1 = int_to_ptr.vmem [resolvable:$true] %s163_s1 }
  0x1d   :  { %192 = vmatprep.subr.bf16.mxu0 %v295_v0  ;;  %v45_v9 = vld [vmem:[#allocation3] sm:$0xf]  ;;  %s265_s21 = scalar_lea.vmem %s164_s1, 128  ;;  %p270_p11 = scmp.lt.s32.totalorder %s164_s1, %s164_s1 }
  0x1e   :  { %p266_p10 = scmp.ne.s32.totalorder %s164_s1, %s265_s21  ;;  %p271_p12 = scmp.lt.s32.totalorder %s265_s21, %s265_s21 }
  0x20   :  { %193 = vmatpush3.bf16.msra.mxu0 %v218_v2  ;;  %p272_p13 = por %p271_p12, %p270_p11 }
  0x21   :  { %194 = vmatprep.subr.bf16.mxu0 %v295_v0 }
  0x22   :  { %p273_p0 = pnand %p272_p13, %p266_p10 }
  0x24   :  { %195 = vmatpush3.bf16.msra.mxu0 %v219_v3 }
  0x25   :  { %196 = vmatprep.subr.bf16.mxu0 %v295_v0 }
  0x28   :  { %197 = vmatpush3.bf16.msra.mxu0 %v220_v4 }
  0x29   :  { %198 = vmatprep.subr.bf16.mxu0 %v295_v0 }
  0x2c   :  { %199 = vmatpush3.bf16.msra.mxu0 %v221_v5 }
  0x2d   :  { %200 = vmatprep.subr.bf16.mxu0 %v295_v0 }
  0x30   :  { %201 = vmatpush3.bf16.msra.mxu0 %v222_v6 }
  0x31   :  { %202 = vmatprep.subr.bf16.mxu0 %v295_v0 }
  0x34   :  { %203 = vmatpush3.bf16.msra.mxu0 %v223_v7 }
  0x35   :  { %204 = vmatprep.subr.bf16.mxu0 %v295_v0 }
  0x38   :  { %205 = vmatpush3.bf16.msra.mxu0 %v224_v8 }
  0x3b   :  { %207 = vmatmul.mubr.bf16.vlgmr.msra.gmra.mxu0 %v45_v9 }
  0xfb   :  { %v144_v10 = vpop.f32.mrf.mxu0 }
  0xfc   :  { %156 = vst [vmem:[#allocation8] sm:$0xff] %v144_v10 }
  0xfd   :  { %v208_v11 = vpop.f32.mrf.mxu0 }
  0xfe   :  { %276 = shalt.err (!%p273_p0)
}
  0xff   :  { %166 = dma.vmem_to_hbm [thread:$0]  %s164_s1, 128, %s324_s2, [#allocation5]   ;;  %v147_v12 = vpop.f32.mrf.mxu0 }
 0x101   :  { %v209_v13 = vpop.f32.mrf.mxu0 }
 0x102   :  { %289 = dma.done.wait [#allocation5], 128  }
 0x103   :  { %290 = vsyncadd [#allocation5], 4294967168 }
 0x104   :  { %170 = vsyncpa [#allocation4], 1 }
 0x105   :  { %171 = vsyncpa [#allocation7], 1 }
 0x106   :  { %172 = vsyncpa [#allocation5], 1 }

</bundles_post_ra>
